<compile_context>
chip_gen: v6e
topology: v6e:2x2x1
jax: 0.10.0
libtpu: 0.0.40
codegen_flags: <defaults>
</compile_context>

<pallas_src>
import functools

import jax
import jax.numpy as jnp
from jax.experimental import pallas as pl
from jax.experimental.pallas import tpu as pltpu


def _round_up(n, m):
    return ((n + m - 1) // m) * m


def mlp_kernel(x_ref, w1_ref, b1_ref, w2_ref, b2_ref, w3_ref, b3_ref, o_ref):
    # x_ref:  (bm, D_in)  f32  (cast to bf16 here, not in the wrapper)
    # w1_ref: (D_in, H)   bf16     b1_ref: (1, H) f32
    # w2_ref: (H, H)      bf16     b2_ref: (1, H) f32
    # w3_ref: (1, H)      f32      b3_ref: (1,)   f32 in SMEM
    # o_ref:  (bm, 1)     f32

    # Layer 1: bf16 MXU matmul, f32 accumulation, f32 bias + ReLU.
    x = x_ref[...].astype(jnp.bfloat16)
    h1 = jnp.dot(x, w1_ref[...], preferred_element_type=jnp.float32)
    h1 = jnp.maximum(h1 + b1_ref[...], 0.0)

    # Layer 2: same recipe; re-quantize the activation to bf16 for the MXU only.
    h2 = jnp.dot(h1.astype(jnp.bfloat16), w2_ref[...],
                 preferred_element_type=jnp.float32)
    h2 = jnp.maximum(h2 + b2_ref[...], 0.0)

    # Layer 3 (128 -> 1): VPU multiply + lane (XLU) reduction instead of a
    # degenerate N=1 MXU matmul; bias added as an SMEM scalar.
    out = jnp.sum(h2 * w3_ref[...], axis=-1, keepdims=True) + b3_ref[0]
    o_ref[...] = out.astype(o_ref.dtype)


@functools.partial(jax.jit, static_argnames=("block_m",))
def single_output_nn_forward(x, params, *, block_m=4096):
    """Fused forward pass of SingleOutputNN.

    x: (B, D_in) float32
    params: dict with w1 (D_in,H), b1 (1,H), w2 (H,H), b2 (1,H), w3 (H,1), b3 (1,1)
    returns: (B, 1) float32
    """
    B, D_in = x.shape
    H = params["w1"].shape[1]

    # Batch tile: big default to amortize per-grid-step overhead, never wider than the
    # (8-rounded) batch.  For large batches keep >= 2 grid steps so the "parallel" axis
    # can be split across v7x's two TensorCores.
    bm = min(block_m, _round_up(B, 8))
    if B >= 2048 and pl.cdiv(B, bm) < 2:
        bm = max(8, _round_up(pl.cdiv(B, 2), 8))

    grid = (pl.cdiv(B, bm),)  # ragged last block: Pallas masks OOB output writes

    # Small, grid-invariant weights: cast/reshape once in the wrapper (few tens of KiB).
    w1 = params["w1"].astype(jnp.bfloat16)
    w2 = params["w2"].astype(jnp.bfloat16)
    b1 = params["b1"].reshape(1, H).astype(jnp.float32)
    b2 = params["b2"].reshape(1, H).astype(jnp.float32)
    w3 = params["w3"].reshape(1, H).astype(jnp.float32)   # row vector for the VPU reduce
    b3 = params["b3"].reshape(1).astype(jnp.float32)       # SMEM scalar

    # Advisory cost for XLA's scheduler: 2 matmuls + the final dot-product per row,
    # x read f32 + output written f32 + one pass over the (tiny) weights.
    flops = 2 * B * (D_in * H + H * H + H)
    bytes_accessed = (B * (D_in * 4 + 4)
                      + (D_in * H + H * H) * 2
                      + (3 * H + 1) * 4)
    cost = pl.CostEstimate(flops=flops, transcendentals=0,
                           bytes_accessed=bytes_accessed)

    out = pl.pallas_call(
        mlp_kernel,
        out_shape=jax.ShapeDtypeStruct((B, 1), jnp.float32),
        grid_spec=pltpu.PrefetchScalarGridSpec(
            num_scalar_prefetch=0,
            grid=grid,
            in_specs=[
                # x: streamed over the batch grid (f32, cast to bf16 inside the kernel).
                pl.BlockSpec((bm, D_in), lambda i: (i, 0)),
                # Grid-invariant weights/biases: constant index_map -> resident in VMEM,
                # DMA'd once, never re-fetched across grid steps.
                pl.BlockSpec((D_in, H), lambda i: (0, 0)),   # w1
                pl.BlockSpec((1, H), lambda i: (0, 0)),      # b1
                pl.BlockSpec((H, H), lambda i: (0, 0)),      # w2
                pl.BlockSpec((1, H), lambda i: (0, 0)),      # b2
                pl.BlockSpec((1, H), lambda i: (0, 0)),      # w3 (row)
                pl.BlockSpec(memory_space=pltpu.MemorySpace.SMEM),  # b3 scalar
            ],
            out_specs=pl.BlockSpec((bm, 1), lambda i: (i, 0)),
        ),
        compiler_params=pltpu.CompilerParams(
            dimension_semantics=("parallel",),
            # Deliberate budget (>= per-generation scoped default on v6e/v7x, raises v5e's
            # 16 MiB): double-buffered x tile + f32 h1/h2 at bm<=8192 stays well under this.
            vmem_limit_bytes=32 * 1024 * 1024,
        ),
        cost_estimate=cost,
    )(x, w1, b1, w2, b2, w3, b3)

    return out


def init_params(key, input_size, hidden=128):
    """Deterministic init mimicking torch.nn.Linear default (uniform +-1/sqrt(fan_in)).

    Weights are stored as (in_features, out_features) so the kernel does x @ W + b.
    """
    k1, k2, k3, k4, k5, k6 = jax.random.split(key, 6)

    def lin(kw, kb, fan_in, fan_out):
        bound = 1.0 / jnp.sqrt(jnp.float32(fan_in))
        w = jax.random.uniform(kw, (fan_in, fan_out), jnp.float32, -bound, bound)
        b = jax.random.uniform(kb, (1, fan_out), jnp.float32, -bound, bound)
        return w, b

    w1, b1 = lin(k1, k2, input_size, hidden)
    w2, b2 = lin(k3, k4, hidden, hidden)
    w3, b3 = lin(k5, k6, hidden, 1)
    return {"w1": w1, "b1": b1, "w2": w2, "b2": b2, "w3": w3, "b3": b3}


def reference_forward(x, p):
    h1 = jnp.maximum(x @ p["w1"] + p["b1"], 0.0)
    h2 = jnp.maximum(h1 @ p["w2"] + p["b2"], 0.0)
    return h2 @ p["w3"] + p["b3"]


if __name__ == "__main__":
    key = jax.random.PRNGKey(0)
    k_x, k_p, k_x2 = jax.random.split(key, 3)

    batch = 8
    input_size = 16  # number of aero-coefficient features fed to the evaluator
    params = init_params(k_p, input_size)

    # Small single-tile case.
    x = jax.random.normal(k_x, (batch, input_size), dtype=jnp.float32)
    out = jax.block_until_ready(single_output_nn_forward(x, params))
    ref = reference_forward(x, params)
    assert out.shape == (batch, 1)
    # bf16 MXU inputs with f32 accumulation: loosened tolerance vs the pure-f32 reference.
    assert jnp.allclose(out, ref, atol=5e-2, rtol=5e-2), "mismatch vs reference (small)"

    # Ragged multi-step grid case (exercises cdiv grid + masked partial last block).
    batch2 = 300
    x2 = jax.random.normal(k_x2, (batch2, input_size), dtype=jnp.float32)
    out2 = jax.block_until_ready(single_output_nn_forward(x2, params, block_m=128))
    ref2 = reference_forward(x2, params)
    assert out2.shape == (batch2, 1)
    assert jnp.allclose(out2, ref2, atol=5e-2, rtol=5e-2), "mismatch vs reference (ragged)"

    print("KERNEL_OK")
</pallas_src>

<mosaic_0001>
module attributes {stable_mosaic.version = 11 : i64} {
  func.func @mlp_kernel(%arg0: i32, %arg1: memref<8x16xf32, #tpu.memory_space<vmem>>, %arg2: memref<16x128xbf16, #tpu.memory_space<vmem>>, %arg3: memref<1x128xf32, #tpu.memory_space<vmem>>, %arg4: memref<128x128xbf16, #tpu.memory_space<vmem>>, %arg5: memref<1x128xf32, #tpu.memory_space<vmem>>, %arg6: memref<1x128xf32, #tpu.memory_space<vmem>>, %arg7: memref<1xf32, #tpu.memory_space<smem>>, %arg8: memref<8x1xf32, #tpu.memory_space<vmem>>) attributes {dimension_semantics = [#tpu.dimension_semantics<parallel>], iteration_bounds = array<i64: 1>, scalar_prefetch = 0 : i64, scratch_operands = 0 : i64, tpu.core_type = #tpu.core_type<tc>, window_params = [{transform_indices = @transform_0, window_bounds = array<i64: 8, 16>}, {pipeline_mode = #tpu.pipeline_mode<synchronous>, transform_indices = @transform_1, window_bounds = array<i64: 16, 128>}, {pipeline_mode = #tpu.pipeline_mode<synchronous>, transform_indices = @transform_2, window_bounds = array<i64: 1, 128>}, {pipeline_mode = #tpu.pipeline_mode<synchronous>, transform_indices = @transform_3, window_bounds = array<i64: 128, 128>}, {pipeline_mode = #tpu.pipeline_mode<synchronous>, transform_indices = @transform_4, window_bounds = array<i64: 1, 128>}, {pipeline_mode = #tpu.pipeline_mode<synchronous>, transform_indices = @transform_5, window_bounds = array<i64: 1, 128>}, {transform_indices = @transform_6, window_bounds = array<i64: 1>}, {transform_indices = @transform_7, window_bounds = array<i64: 8, 1>}]} {
    %c0 = arith.constant 0 : index
    %c0_0 = arith.constant 0 : index
    %0 = vector.load %arg1[%c0, %c0_0] : memref<8x16xf32, #tpu.memory_space<vmem>>, vector<8x16xf32>
    %1 = arith.truncf %0 : vector<8x16xf32> to vector<8x16xbf16>
    %c0_1 = arith.constant 0 : index
    %c0_2 = arith.constant 0 : index
    %2 = vector.load %arg2[%c0_1, %c0_2] : memref<16x128xbf16, #tpu.memory_space<vmem>>, vector<16x128xbf16>
    %cst = arith.constant dense<0.000000e+00> : vector<8x128xf32>
    %3 = tpu.matmul %1, %2, %cst {dimension_numbers = #tpu.dot_dimension_numbers<[1], [0], [0], [1], [0, 0, 1, 1], [], []>} : vector<8x16xbf16>, vector<16x128xbf16>, vector<8x128xf32> -> vector<8x128xf32>
    %c0_3 = arith.constant 0 : index
    %c0_4 = arith.constant 0 : index
    %4 = vector.load %arg3[%c0_3, %c0_4] : memref<1x128xf32, #tpu.memory_space<vmem>>, vector<1x128xf32>
    %5 = vector.broadcast %4 : vector<1x128xf32> to vector<8x128xf32>
    %6 = arith.addf %3, %5 : vector<8x128xf32>
    %cst_5 = arith.constant 0.000000e+00 : f32
    %7 = vector.broadcast %cst_5 : f32 to vector<8x128xf32>
    %8 = arith.maximumf %6, %7 : vector<8x128xf32>
    %9 = arith.truncf %8 : vector<8x128xf32> to vector<8x128xbf16>
    %c0_6 = arith.constant 0 : index
    %c0_7 = arith.constant 0 : index
    %10 = vector.load %arg4[%c0_6, %c0_7] : memref<128x128xbf16, #tpu.memory_space<vmem>>, vector<128x128xbf16>
    %cst_8 = arith.constant dense<0.000000e+00> : vector<8x128xf32>
    %11 = tpu.matmul %9, %10, %cst_8 {dimension_numbers = #tpu.dot_dimension_numbers<[1], [0], [0], [1], [0, 0, 1, 1], [], []>} : vector<8x128xbf16>, vector<128x128xbf16>, vector<8x128xf32> -> vector<8x128xf32>
    %c0_9 = arith.constant 0 : index
    %c0_10 = arith.constant 0 : index
    %12 = vector.load %arg5[%c0_9, %c0_10] : memref<1x128xf32, #tpu.memory_space<vmem>>, vector<1x128xf32>
    %13 = vector.broadcast %12 : vector<1x128xf32> to vector<8x128xf32>
    %14 = arith.addf %11, %13 : vector<8x128xf32>
    %cst_11 = arith.constant 0.000000e+00 : f32
    %15 = vector.broadcast %cst_11 : f32 to vector<8x128xf32>
    %16 = arith.maximumf %14, %15 : vector<8x128xf32>
    %c0_12 = arith.constant 0 : index
    %c0_13 = arith.constant 0 : index
    %17 = vector.load %arg6[%c0_12, %c0_13] : memref<1x128xf32, #tpu.memory_space<vmem>>, vector<1x128xf32>
    %18 = vector.broadcast %17 : vector<1x128xf32> to vector<8x128xf32>
    %19 = arith.mulf %16, %18 : vector<8x128xf32>
    %cst_14 = arith.constant dense<0.000000e+00> : vector<8xf32>
    %20 = vector.multi_reduction <add>, %19, %cst_14 [1] : vector<8x128xf32> to vector<8xf32>
    %21 = vector.shape_cast %20 : vector<8xf32> to vector<8x1xf32>
    %c0_15 = arith.constant 0 : index
    %22 = memref.load %arg7[%c0_15] : memref<1xf32, #tpu.memory_space<smem>>
    %23 = vector.broadcast %22 : f32 to vector<8x1xf32>
    %24 = arith.addf %21, %23 : vector<8x1xf32>
    %c0_16 = arith.constant 0 : index
    %c0_17 = arith.constant 0 : index
    %25 = vector.load %arg8[%c0_16, %c0_17] : memref<8x1xf32, #tpu.memory_space<vmem>>, vector<8x1xf32>
    tpu.vector_store %arg8[%c0_16, %c0_17], %24 {strides = array<i32>} : memref<8x1xf32, #tpu.memory_space<vmem>>, vector<8x1xf32>,
    return
  }
  func.func @transform_0(%arg0: i32) -> (i32, i32) {
    %c0_i32 = arith.constant 0 : i32
    %c0_i32_0 = arith.constant 0 : i32
    return %arg0, %c0_i32 : i32, i32
  }
  func.func @transform_1(%arg0: i32) -> (i32, i32) {
    %c0_i32 = arith.constant 0 : i32
    %c0_i32_0 = arith.constant 0 : i32
    %c0_i32_1 = arith.constant 0 : i32
    return %c0_i32, %c0_i32_0 : i32, i32
  }
  func.func @transform_2(%arg0: i32) -> (i32, i32) {
    %c0_i32 = arith.constant 0 : i32
    %c0_i32_0 = arith.constant 0 : i32
    %c0_i32_1 = arith.constant 0 : i32
    return %c0_i32, %c0_i32_0 : i32, i32
  }
  func.func @transform_3(%arg0: i32) -> (i32, i32) {
    %c0_i32 = arith.constant 0 : i32
    %c0_i32_0 = arith.constant 0 : i32
    %c0_i32_1 = arith.constant 0 : i32
    return %c0_i32, %c0_i32_0 : i32, i32
  }
  func.func @transform_4(%arg0: i32) -> (i32, i32) {
    %c0_i32 = arith.constant 0 : i32
    %c0_i32_0 = arith.constant 0 : i32
    %c0_i32_1 = arith.constant 0 : i32
    return %c0_i32, %c0_i32_0 : i32, i32
  }
  func.func @transform_5(%arg0: i32) -> (i32, i32) {
    %c0_i32 = arith.constant 0 : i32
    %c0_i32_0 = arith.constant 0 : i32
    %c0_i32_1 = arith.constant 0 : i32
    return %c0_i32, %c0_i32_0 : i32, i32
  }
  func.func @transform_6(%arg0: i32) -> i32 {
    %c0_i32 = arith.constant 0 : i32
    %c0_i32_0 = arith.constant 0 : i32
    return %c0_i32 : i32
  }
  func.func @transform_7(%arg0: i32) -> (i32, i32) {
    %c0_i32 = arith.constant 0 : i32
    %c0_i32_0 = arith.constant 0 : i32
    return %arg0, %c0_i32 : i32, i32
  }
}

</mosaic_0001>

<bundles_post_ra>
// kernel: single_output_nn_forward.1
= control target key start
LH: loop header
LB: loop body
LE: loop exit
PB: predicated region body
PF: predicated region fallthrough
CT: control target
= control target key end

     0   :  { %v283_v0 = vmov 0.0   ;;  %vm284_vm0 = vmmov 0   ;;  %vm45_vm1 = vcmask 130048   ;;  %vm216_vm2 = vcmask 7168   ;;  %s370_s1 = inlined_call_operand.vmem [shape: bf16[16,128], index: 1, kind: input, shape index: {}]   ;;  %s371_s0 = inlined_call_operand.vmem [shape: f32[8,16], index: 0, kind: input, shape index: {}]   ;;  %s372_s3 = inlined_call_operand.vmem [shape: bf16[128,128], index: 3, kind: input, shape index: {}]   ;;  %s373_s2 = inlined_call_operand.vmem [shape: f32[1,128], index: 2, kind: input, shape index: {}]   ;;  %s374_s4 = inlined_call_operand.vmem [shape: f32[1,128], index: 4, kind: input, shape index: {}]   ;;  %s375_s5 = inlined_call_operand.vmem [shape: f32[1,128], index: 5, kind: input, shape index: {}]   ;;  %s376_s6 = inlined_call_operand.<no memory space> [shape: f32[1], index: 6, kind: input, shape index: {}]   ;;  %s377_s7 = inlined_call_operand.vmem [shape: f32[8,1], index: 7, kind: output, shape index: {}]  }
   0x1   :  { %246 = vmatprep.subr.bf16.mxu0 %v283_v0  ;;  %v274_v1 = vld [vmem:[%s370_s1] sm:$0xff]   ;;  %248 = vmatprep.mubr.msk.bf16.mxu0 %vm284_vm0, %v283_v0  ;;  %v275_v4 = vld [vmem:[%s372_s3 + $0x38] sm:$0xff]   ;;  %v276_v5 = vld [vmem:[%s372_s3 + $0x30] sm:$0xff]   ;;  %v214_v29 = vstv %s376_s6 }
   0x2   :  { %v28_v2 = vld [vmem:[%s371_s0] sm:$0xff]  ;;  %252 = vmatprep.subr.bf16.mxu1 %v283_v0  ;;  %268 = vmatprep.mubr.msk.bf16.mxu1 %vm284_vm0, %v283_v0  ;;  %v277_v6 = vld [vmem:[%s372_s3 + $0x28] sm:$0xff]   ;;  %v279_v8 = vld [vmem:[%s372_s3 + $0x18] sm:$0xff]  }
   0x3   :  { %247 = vmatpush3.bf16.msra.mxu0 %v274_v1  ;;  %v29_v3 = vpack.c.bf16 %v28_v2, %v28_v2  ;;  %253 = vmatpush3.bf16.msra.mxu1 %v275_v4  ;;  %v278_v7 = vld [vmem:[%s372_s3 + $0x20] sm:$0xff]   ;;  %v280_v9 = vld [vmem:[%s372_s3 + $0x10] sm:$0xff]   ;;  %v281_v10 = vld [vmem:[%s372_s3 + $0x8] sm:$0xff]  }
   0x4   :  { %254 = vmatprep.subr.bf16.mxu1 %v283_v0  ;;  %v282_v11 = vld [vmem:[%s372_s3] sm:$0xff]  }
   0x5   :  { %v222_v12 = vld [vmem:[%s373_s2] ss:$0 sm:$0xff] }
   0x6   :  { %249 = vmatmul.mubr.msk.bf16.vlgmr.msra.gmra.mxu0 %vm45_vm1, %v29_v3  ;;  %v225_v20 = vld [vmem:[%s374_s4] ss:$0 sm:$0xff] }
   0x7   :  { %255 = vmatpush3.bf16.msra.mxu1 %v276_v5  ;;  %v234_v24 = vld [vmem:[%s375_s5] ss:$0 sm:$0xff] }
   0x8   :  { %256 = vmatprep.subr.bf16.mxu1 %v283_v0 }
   0xb   :  { %257 = vmatpush3.bf16.msra.mxu1 %v277_v6 }
   0xc   :  { %258 = vmatprep.subr.bf16.mxu1 %v283_v0 }
   0xf   :  { %259 = vmatpush3.bf16.msra.mxu1 %v278_v7 }
  0x10   :  { %260 = vmatprep.subr.bf16.mxu1 %v283_v0 }
  0x13   :  { %261 = vmatpush3.bf16.msra.mxu1 %v279_v8 }
  0x14   :  { %262 = vmatprep.subr.bf16.mxu1 %v283_v0 }
  0x17   :  { %263 = vmatpush3.bf16.msra.mxu1 %v280_v9 }
  0x18   :  { %264 = vmatprep.subr.bf16.mxu1 %v283_v0 }
  0x1b   :  { %265 = vmatpush3.bf16.msra.mxu1 %v281_v10 }
  0x1c   :  { %266 = vmatprep.subr.bf16.mxu1 %v283_v0 }
  0x1f   :  { %267 = vmatpush3.bf16.msra.mxu1 %v282_v11 }
  0xc6   :  { %v83_v13 = vpop.f32.mrf.mxu0 }
  0xc7   :  { %v84_v14 = vadd.f32 %v222_v12, %v83_v13 }
  0xc8   :  { %v250_v15 = vpop.f32.mrf.mxu0 }
  0xc9   :  { %v89_v16 = vmax.f32 %v84_v14, 0.0 }
  0xca   :  { %v86_v17 = vpop.f32.mrf.mxu0 }
  0xcb   :  { %v90_v18 = vpack.c.bf16 %v89_v16, %v89_v16 }
  0xcc   :  { %v251_v19 = vpop.f32.mrf.mxu0 }
  0xcd   :  { %269 = vmatmul.mubr.bf16.vlgmr.msra.gmra.mxu1 %v90_v18 }
 0x18d   :  { %v196_v21 = vpop.f32.mrf.mxu1 }
 0x18e   :  { %v197_v22 = vadd.f32 %v225_v20, %v196_v21 }
 0x18f   :  { %v270_v23 = vpop.f32.mrf.mxu1 }
 0x190   :  { %v202_v25 = vmax.f32 %v197_v22, 0.0 }
 0x191   :  { %v199_v26 = vpop.f32.mrf.mxu1 }
 0x192   :  { %v210_v27 = vmul.f32 %v234_v24, %v202_v25 }
 0x193   :  { %v271_v28 = vpop.f32.mrf.mxu1 }
 0x194   :  { %211 = vadd.xlane.f32.xlu0 %v210_v27 }
 0x21d   :  { %v212_v30 = vpop.xlane.xlu0 %211 }
 0x21e   :  { %v215_v31 = vadd.f32 %v214_v29, %v212_v30 }
 0x220   :  { %217 = vst.msk [vmem:[%s377_s7] sm:$0xff] %vm216_vm2, %v215_v31 }

</bundles_post_ra>
